<compile_context>
chip_gen: v7x
topology: tpu7x:2x2x1
jax: 0.10.0
libtpu: 0.0.40
codegen_flags: <defaults>
</compile_context>

<pallas_src>
import functools

import jax
import jax.numpy as jnp
from jax import lax
from jax.experimental import pallas as pl
from jax.experimental.pallas import tpu as pltpu

LANE = 128
SUBLANE = 8


def _round_up(x, m):
    return (x + m - 1) // m * m


def downsample_kernel(xe_ref, xo_ref, w_ref, b_ref, o_ref, *, bn, th, wo_pad, cp):
    """One grid step: `bn` images x `th` output rows.

    xe_ref: (bn, th+1, wo_pad, 3*cp) even padded rows 2*r0 .. 2*(r0+th)  (+halo)
    xo_ref: (bn, th,   wo_pad, 3*cp) odd  padded rows 2*r0+1 .. 2*(r0+th)-1
    w_ref : (3, 3*cp, cp)            one (3cp, cp) weight matrix per kernel row
    b_ref : (1, cp)                  bias (f32)
    o_ref : (bn, th, wo_pad, cp)     output rows r0 .. r0+th-1 (f32)
    """
    m = bn * th * wo_pad
    k = 3 * cp
    # All three LHS slabs are offset slices along leading (non-tiled) dims and
    # wo_pad % 8 == 0, 3*cp % 128 == 0, so the reshapes are free (no relayout).
    xe0 = xe_ref[:, :th].reshape(m, k)         # kernel row ky=0 -> padded row 2r
    xo = xo_ref[...].reshape(m, k)             # kernel row ky=1 -> padded row 2r+1
    xe1 = xe_ref[:, 1:th + 1].reshape(m, k)    # kernel row ky=2 -> padded row 2r+2
    acc = jnp.dot(xe0, w_ref[0], preferred_element_type=jnp.float32)
    acc = acc + jnp.dot(xo, w_ref[1], preferred_element_type=jnp.float32)
    acc = acc + jnp.dot(xe1, w_ref[2], preferred_element_type=jnp.float32)
    acc = acc + b_ref[...]                     # (1, cp) broadcasts over (m, cp)
    o_ref[...] = acc.reshape(bn, th, wo_pad, cp).astype(o_ref.dtype)


def _choose_tiles(n, ho, wo_pad, target_m=256):
    """Pick (bn, th): matmul M = bn*th*wo_pad targets ~256 (MXU rows) while
    keeping >=2 grid steps when possible (two v7x TensorCores)."""
    th = 1
    for t in range(1, ho + 1):
        if ho % t == 0 and t * wo_pad <= target_m:
            th = t
    n_row_tiles = ho // th
    bn = 1
    min_steps = min(2, n * n_row_tiles)
    for b in range(1, n + 1):
        if (n % b == 0 and b * th * wo_pad <= target_m
                and (n // b) * n_row_tiles >= min_steps):
            bn = b
    return bn, th


def downsample(x_nchw, w_oihw, bias, *, compute_dtype=jnp.bfloat16):
    """PyTorch `Downsample` forward: Conv2d(C, C, 3, stride=2, padding=1)(x)."""
    N, C, H, W = x_nchw.shape
    co, ci, kh, kw = w_oihw.shape
    assert (co, ci, kh, kw) == (C, C, 3, 3)
    ho = (H - 1) // 2 + 1
    wo = (W - 1) // 2 + 1
    cp = _round_up(C, LANE)           # lane-dense channels
    wo_pad = _round_up(wo, SUBLANE)   # sublane-dense output width

    bn, th = _choose_tiles(N, ho, wo_pad)
    n_row_tiles = ho // th

    # ------------------- wrapper-side layout (fused XLA) --------------------
    # NCHW -> NHWC, cast straight to the MXU operand dtype (no f32 detour),
    # zero-pad: 1 row/col on top/left (PyTorch padding=1) and just enough on
    # bottom/right so padded rows 0..2*ho / cols 0..2*wo exist.  For even H/W
    # PyTorch's bottom/right pad row is never read by the stride-2 conv, so
    # omitting it is exact; for odd H/W (2*ho - H == 1) it is the zero pad row.
    x = jnp.transpose(x_nchw, (0, 2, 3, 1)).astype(compute_dtype)
    x = jnp.pad(x, ((0, 0), (1, 2 * ho - H), (1, 2 * wo - W), (0, cp - C)))
    # column-im2col: lane group kx of output column c holds padded column 2c+kx.
    x_cols = jnp.concatenate(
        [x[:, :, kx::2, :][:, :, :wo, :] for kx in range(3)], axis=-1)
    if wo_pad != wo:
        x_cols = jnp.pad(x_cols, ((0, 0), (0, 0), (0, wo_pad - wo), (0, 0)))
    # Split padded rows by parity: output row r uses even rows 2r and 2r+2
    # (kernel rows 0 / 2) and odd row 2r+1 (kernel row 1).
    x_even = x_cols[:, 0::2]                       # (N, ho+1, wo_pad, 3cp)
    x_odd = x_cols[:, 1::2]                        # (N, ho,   wo_pad, 3cp)
    # Pack even rows per row-tile with their 1-row halo (tile i holds even rows
    # i*th .. i*th+th); odd rows tile without overlap.
    x_even_t = jnp.concatenate(
        [x_even[:, :ho].reshape(N, n_row_tiles, th, wo_pad, 3 * cp),
         x_even[:, th::th][:, :, None]], axis=2)
    x_even_t = x_even_t.reshape(N, n_row_tiles * (th + 1), wo_pad, 3 * cp)

    # Weights: OIHW -> (ky, kx, ci, co), zero-pad channels, one (3cp, cp)
    # matrix per kernel row (row index kx*cp + ci matches x_cols lane groups).
    w = jnp.transpose(w_oihw, (2, 3, 1, 0))
    w = jnp.pad(w, ((0, 0), (0, 0), (0, cp - C), (0, cp - C)))
    w = w.reshape(3, 3 * cp, cp).astype(compute_dtype)

    b = jnp.pad(bias.astype(jnp.float32), (0, cp - C)).reshape(1, cp)

    esz = jnp.dtype(compute_dtype).itemsize
    cost = pl.CostEstimate(
        flops=2 * N * ho * wo_pad * 3 * (3 * cp) * cp,
        transcendentals=0,
        bytes_accessed=(x_even_t.size + x_odd.size + w.size) * esz
        + b.size * 4 + N * ho * wo_pad * cp * 4)

    kernel = functools.partial(downsample_kernel, bn=bn, th=th,
                               wo_pad=wo_pad, cp=cp)
    out = pl.pallas_call(
        kernel,
        out_shape=jax.ShapeDtypeStruct((N, ho, wo_pad, cp), jnp.float32),
        grid_spec=pltpu.PrefetchScalarGridSpec(
            num_scalar_prefetch=0,
            grid=(N // bn, n_row_tiles),
            in_specs=[
                pl.BlockSpec((bn, th + 1, wo_pad, 3 * cp),
                             lambda n, i: (n, i, 0, 0)),
                pl.BlockSpec((bn, th, wo_pad, 3 * cp),
                             lambda n, i: (n, i, 0, 0)),
                pl.BlockSpec((3, 3 * cp, cp), lambda n, i: (0, 0, 0)),
                pl.BlockSpec((1, cp), lambda n, i: (0, 0)),
            ],
            out_specs=pl.BlockSpec((bn, th, wo_pad, cp),
                                   lambda n, i: (n, i, 0, 0)),
        ),
        compiler_params=pltpu.CompilerParams(
            dimension_semantics=("parallel", "parallel"),
            vmem_limit_bytes=32 * 1024 * 1024),
        cost_estimate=cost,
    )(x_even_t, x_odd, w, b)

    if wo_pad != wo or cp != C:
        out = out[:, :, :wo, :C]
    # TODO(synk): expose an NHWC / bf16 output path so surrounding layers can
    # skip the NCHW<->NHWC transposes and f32 round trip around every call.
    return jnp.transpose(out, (0, 3, 1, 2))


# ---------------------------- pure-JAX reference ----------------------------
def ref_forward(x_nchw, w_oihw, bias):
    y = lax.conv_general_dilated(
        x_nchw, w_oihw, window_strides=(2, 2), padding=((1, 1), (1, 1)),
        dimension_numbers=("NCHW", "OIHW", "NCHW"))
    return y + bias.reshape(1, -1, 1, 1)


if __name__ == "__main__":
    key = jax.random.PRNGKey(0)
    N, C, H, W = 2, 128, 16, 16          # small, lane-dense VQ Downsample stage
    k1, k2, k3 = jax.random.split(key, 3)
    x = jax.random.normal(k1, (N, C, H, W), jnp.float32)
    w = (0.05 * jax.random.normal(k2, (C, C, 3, 3))).astype(jnp.float32)
    b = (0.1 * jax.random.normal(k3, (C,))).astype(jnp.float32)

    ref = ref_forward(x, w, b)

    # Default path: bf16 MXU operands, f32 accumulation / bias / output.
    out_bf16 = downsample(x, w, b)
    jax.block_until_ready(out_bf16)
    assert out_bf16.shape == (N, C, H // 2, W // 2), out_bf16.shape
    err_bf16 = float(jnp.max(jnp.abs(out_bf16 - ref)))
    assert err_bf16 < 8e-2, f"bf16 max abs err {err_bf16}"

    # f32 operand path: tight check of the row-decomposition itself.
    out_f32 = downsample(x, w, b, compute_dtype=jnp.float32)
    jax.block_until_ready(out_f32)
    err_f32 = float(jnp.max(jnp.abs(out_f32 - ref)))
    assert err_f32 < 1e-2, f"f32 max abs err {err_f32}"

    print("KERNEL_OK")
</pallas_src>

<mosaic_0001>
module attributes {stable_mosaic.version = 11 : i64} {
  func.func @downsample_kernel(%arg0: i32, %arg1: i32, %arg2: memref<1x9x8x384xbf16, #tpu.memory_space<vmem>>, %arg3: memref<1x8x8x384xbf16, #tpu.memory_space<vmem>>, %arg4: memref<3x384x128xbf16, #tpu.memory_space<vmem>>, %arg5: memref<1x128xf32, #tpu.memory_space<vmem>>, %arg6: memref<1x8x8x128xf32, #tpu.memory_space<vmem>>) attributes {dimension_semantics = [#tpu.dimension_semantics<parallel>, #tpu.dimension_semantics<parallel>], iteration_bounds = array<i64: 2, 1>, scalar_prefetch = 0 : i64, scratch_operands = 0 : i64, tpu.core_type = #tpu.core_type<tc>, window_params = [{transform_indices = @transform_0, window_bounds = array<i64: 1, 9, 8, 384>}, {transform_indices = @transform_1, window_bounds = array<i64: 1, 8, 8, 384>}, {pipeline_mode = #tpu.pipeline_mode<synchronous>, transform_indices = @transform_2, window_bounds = array<i64: 3, 384, 128>}, {pipeline_mode = #tpu.pipeline_mode<synchronous>, transform_indices = @transform_3, window_bounds = array<i64: 1, 128>}, {transform_indices = @transform_4, window_bounds = array<i64: 1, 8, 8, 128>}]} {
    %c0 = arith.constant 0 : index
    %c0_0 = arith.constant 0 : index
    %c0_1 = arith.constant 0 : index
    %c0_2 = arith.constant 0 : index
    %0 = vector.load %arg2[%c0, %c0_0, %c0_1, %c0_2] : memref<1x9x8x384xbf16, #tpu.memory_space<vmem>>, vector<1x8x8x384xbf16>
    %1 = vector.shape_cast %0 : vector<1x8x8x384xbf16> to vector<64x384xbf16>
    %c0_3 = arith.constant 0 : index
    %c0_4 = arith.constant 0 : index
    %c0_5 = arith.constant 0 : index
    %c0_6 = arith.constant 0 : index
    %2 = vector.load %arg3[%c0_3, %c0_4, %c0_5, %c0_6] : memref<1x8x8x384xbf16, #tpu.memory_space<vmem>>, vector<1x8x8x384xbf16>
    %3 = vector.shape_cast %2 : vector<1x8x8x384xbf16> to vector<64x384xbf16>
    %c0_7 = arith.constant 0 : index
    %c1 = arith.constant 1 : index
    %c0_8 = arith.constant 0 : index
    %c0_9 = arith.constant 0 : index
    %4 = vector.load %arg2[%c0_7, %c1, %c0_8, %c0_9] : memref<1x9x8x384xbf16, #tpu.memory_space<vmem>>, vector<1x8x8x384xbf16>
    %5 = vector.shape_cast %4 : vector<1x8x8x384xbf16> to vector<64x384xbf16>
    %c0_10 = arith.constant 0 : index
    %c0_11 = arith.constant 0 : index
    %c0_12 = arith.constant 0 : index
    %6 = vector.load %arg4[%c0_10, %c0_11, %c0_12] : memref<3x384x128xbf16, #tpu.memory_space<vmem>>, vector<1x384x128xbf16>
    %7 = vector.shape_cast %6 : vector<1x384x128xbf16> to vector<384x128xbf16>
    %cst = arith.constant dense<0.000000e+00> : vector<64x128xf32>
    %8 = tpu.matmul %1, %7, %cst {dimension_numbers = #tpu.dot_dimension_numbers<[1], [0], [0], [1], [0, 0, 1, 1], [], []>} : vector<64x384xbf16>, vector<384x128xbf16>, vector<64x128xf32> -> vector<64x128xf32>
    %c1_13 = arith.constant 1 : index
    %c0_14 = arith.constant 0 : index
    %c0_15 = arith.constant 0 : index
    %9 = vector.load %arg4[%c1_13, %c0_14, %c0_15] : memref<3x384x128xbf16, #tpu.memory_space<vmem>>, vector<1x384x128xbf16>
    %10 = vector.shape_cast %9 : vector<1x384x128xbf16> to vector<384x128xbf16>
    %cst_16 = arith.constant dense<0.000000e+00> : vector<64x128xf32>
    %11 = tpu.matmul %3, %10, %cst_16 {dimension_numbers = #tpu.dot_dimension_numbers<[1], [0], [0], [1], [0, 0, 1, 1], [], []>} : vector<64x384xbf16>, vector<384x128xbf16>, vector<64x128xf32> -> vector<64x128xf32>
    %12 = arith.addf %8, %11 : vector<64x128xf32>
    %c2 = arith.constant 2 : index
    %c0_17 = arith.constant 0 : index
    %c0_18 = arith.constant 0 : index
    %13 = vector.load %arg4[%c2, %c0_17, %c0_18] : memref<3x384x128xbf16, #tpu.memory_space<vmem>>, vector<1x384x128xbf16>
    %14 = vector.shape_cast %13 : vector<1x384x128xbf16> to vector<384x128xbf16>
    %cst_19 = arith.constant dense<0.000000e+00> : vector<64x128xf32>
    %15 = tpu.matmul %5, %14, %cst_19 {dimension_numbers = #tpu.dot_dimension_numbers<[1], [0], [0], [1], [0, 0, 1, 1], [], []>} : vector<64x384xbf16>, vector<384x128xbf16>, vector<64x128xf32> -> vector<64x128xf32>
    %16 = arith.addf %12, %15 : vector<64x128xf32>
    %c0_20 = arith.constant 0 : index
    %c0_21 = arith.constant 0 : index
    %17 = vector.load %arg5[%c0_20, %c0_21] : memref<1x128xf32, #tpu.memory_space<vmem>>, vector<1x128xf32>
    %18 = vector.broadcast %17 : vector<1x128xf32> to vector<64x128xf32>
    %19 = arith.addf %16, %18 : vector<64x128xf32>
    %20 = vector.shape_cast %19 : vector<64x128xf32> to vector<1x8x8x128xf32>
    %c0_22 = arith.constant 0 : index
    %c0_23 = arith.constant 0 : index
    %c0_24 = arith.constant 0 : index
    %c0_25 = arith.constant 0 : index
    %21 = vector.load %arg6[%c0_22, %c0_23, %c0_24, %c0_25] : memref<1x8x8x128xf32, #tpu.memory_space<vmem>>, vector<1x8x8x128xf32>
    tpu.vector_store %arg6[%c0_22, %c0_23, %c0_24, %c0_25], %20 {strides = array<i32>} : memref<1x8x8x128xf32, #tpu.memory_space<vmem>>, vector<1x8x8x128xf32>,
    return
  }
  func.func @transform_0(%arg0: i32, %arg1: i32) -> (i32, i32, i32, i32) {
    %c0_i32 = arith.constant 0 : i32
    %c0_i32_0 = arith.constant 0 : i32
    %c0_i32_1 = arith.constant 0 : i32
    return %arg0, %arg1, %c0_i32, %c0_i32_0 : i32, i32, i32, i32
  }
  func.func @transform_1(%arg0: i32, %arg1: i32) -> (i32, i32, i32, i32) {
    %c0_i32 = arith.constant 0 : i32
    %c0_i32_0 = arith.constant 0 : i32
    %c0_i32_1 = arith.constant 0 : i32
    return %arg0, %arg1, %c0_i32, %c0_i32_0 : i32, i32, i32, i32
  }
  func.func @transform_2(%arg0: i32, %arg1: i32) -> (i32, i32, i32) {
    %c0_i32 = arith.constant 0 : i32
    %c0_i32_0 = arith.constant 0 : i32
    %c0_i32_1 = arith.constant 0 : i32
    %c0_i32_2 = arith.constant 0 : i32
    return %c0_i32, %c0_i32_0, %c0_i32_1 : i32, i32, i32
  }
  func.func @transform_3(%arg0: i32, %arg1: i32) -> (i32, i32) {
    %c0_i32 = arith.constant 0 : i32
    %c0_i32_0 = arith.constant 0 : i32
    %c0_i32_1 = arith.constant 0 : i32
    return %c0_i32, %c0_i32_0 : i32, i32
  }
  func.func @transform_4(%arg0: i32, %arg1: i32) -> (i32, i32, i32, i32) {
    %c0_i32 = arith.constant 0 : i32
    %c0_i32_0 = arith.constant 0 : i32
    %c0_i32_1 = arith.constant 0 : i32
    return %arg0, %arg1, %c0_i32, %c0_i32_0 : i32, i32, i32, i32
  }
}

</mosaic_0001>

<bundles_post_ra>
// kernel: tpu_custom_call.1
= control target key start
LH: loop header
LB: loop body
LE: loop exit
PB: predicated region body
PF: predicated region fallthrough
CT: control target
= control target key end

     0   :  { %s2845_s0 = inlined_call_operand.hbm [shape: bf16[2,9,8,384], index: 0, kind: input, shape index: {}]   ;;  %s2846_s1 = inlined_call_operand.hbm [shape: bf16[2,8,8,384], index: 1, kind: input, shape index: {}]   ;;  %s2847_s2 = inlined_call_operand.hbm [shape: bf16[3,384,128], index: 2, kind: input, shape index: {}]   ;;  %s2848_s3 = inlined_call_operand.vmem [shape: f32[1,128], index: 3, kind: input, shape index: {}]   ;;  %s2849_s4 = inlined_call_operand.hbm [shape: f32[2,8,8,128], index: 4, kind: output, shape index: {}]  }
   0x1   :  { %2854 = sst [smem:[#allocation15_spill]] %s2845_s0 }
   0x2   :  { %2855 = sst [smem:[#allocation16_spill]] %s2847_s2 }
   0x3   :  { %9 = vsyncpa [#allocation3], 0 }
   0x4   :  { %11 = vsyncpa [#allocation3 + $0x1], 0 }
   0x5   :  { %12 = vsyncpa [#allocation6], 0 }
   0x6   :  { %14 = vsyncpa [#allocation6 + $0x1], 0 }
   0x7   :  { %15 = vsyncpa [#allocation4], 0 }
   0x8   :  { %17 = vsyncpa [#allocation4 + $0x1], 0  ;;  %s2502_s15 = smov 0   ;;  %s2504_s16 = smov 0  }
   0x9   :  { %s2506_s17 = smov 0   ;;  %s2508_s18 = smov 0  }
   0xa   :  { %s2510_s19 = smov 0   ;;  %s2512_s20 = smov 0  }
   0xb LB: > { %s2533_s21 = sadd.s32 4294967295, %s2465_s20   ;;  %s1677_s22 = sadd.s32 4294967294, %s2465_s20   ;;  %s2465_s20 = sphi %s2512_s20, %s23_s20   ;;  %s2461_s19 = sphi %s2510_s19, %s2880_s19   ;;  %s2457_s18 = sphi %s2508_s18, %s2879_s18   ;;  %s2453_s17 = sphi %s2506_s17, %s2878_s17   ;;  %s2449_s16 = sphi %s2504_s16, %s2877_s16   ;;  %s2445_s15 = sphi %s2502_s15, %s2876_s15  }
   0xc   : > { %p57_p0 = scmp.ne.s32.totalorder %s2449_s16, %s2445_s15  ;;  %p2850_p1 = scmp.eq.s32.totalorder %s2533_s21, 0 }
   0xd   : > { %p159_p3 = scmp.eq.s32.totalorder %s1677_s22, 1  ;;  %p1678_p5 = scmp.ge.s32.totalorder %s2465_s20, 1 }
   0xe   : > { %p2542_p4 = por %p2850_p1, %p57_p0  ;;  %p166_p7 = scmp.lt.s32.totalorder %s2465_s20, 3 }
   0xf   : > { %p2547_p6 = por %p159_p3, %p57_p0  ;;  %s2467_s26 = smov [#allocation7]  }
  0x10   : > { %s2856_s23 = scalar_select %p2542_p4, 1, 0 }
  0x11   : > { %s2857_s24 = scalar_select %p2547_p6, 1, 0 }
  0x12   : > { %p2552_p8 = pnand %p1678_p5, %p166_p7  ;;  %s178_s27 = sshll.u32 %s2467_s26, 4  ;;  %s179_s27 = int_to_ptr.vmem [resolvable:$true] %s178_s27 }
  0x13   : > { %s35_s29 = sadd.s32 1, %s2461_s19  ;;  %s2860_s2 = sld [smem:[#allocation16_spill]] }
  0x14   : > { %s2858_s25 = scalar_select %p2552_p8, 1, 0 }
  0x15   : > { %p2101_p9 = pneg %p2552_p8 }
  0x17   : > { %p2561_p11 = pnand %p2101_p9, %p2850_p1 }
  0x19   : > { %s2287_s6 = scalar_lea.hbm %s2860_s2, 9216  ;;  %p2289_p13 = pneg %p2561_p11 }
  0x1a   : > { %p2288_p12 = scmp.ne.s32.totalorder %s2860_s2, %s2287_s6  ;;  %p2294_p5 = scmp.lt.u32.totalorder %s2287_s6, %s2860_s2 }
  0x1c   : > { %p2290_p0 = pnand %p2289_p13, %p2288_p12 }
  0x1e   : > { %p2291_p3 = pneg %p2290_p0 }
  0x20   : > { %p2296_p7 = pnand %p2294_p5, %p2291_p3 }
  0x22   : > { %2299 = shalt.err (!%p2296_p7)
}
  0x23   : > { %s2300_s11 = scalar_lea.vmem %s179_s27, 9216  ;;  %p2308_p2 = scmp.lt.s32.totalorder %s179_s27, %s179_s27 }
  0x24   : > { %p2301_p9 = scmp.ne.s32.totalorder %s179_s27, %s2300_s11  ;;  %p2309_p6 = scmp.lt.s32.totalorder %s2300_s11, %s2300_s11 }
  0x26   : > { %p2303_p10 = pnand %p2301_p9, %p2289_p13  ;;  %p2310_p4 = por %p2309_p6, %p2308_p2 }
  0x28   : > { %p2304_p1 = pneg %p2303_p10 }
  0x2a   : > { %p2311_p8 = pnand %p2310_p4, %p2304_p1 }
  0x2c   : > { %2314 = shalt.err (!%p2311_p8)
}
  0x2d   : > { %s2468_s12 = smov 64   ;;  %s2469_s13 = smov 4  }
  0x2e   : > { %2104 = dma.hbm_to_vmem [thread:$0]  (!%p2561_p11), %s2860_s2, 9216, %s179_s27, [#allocation6], %s2468_s12, %s2468_s12, %s2469_s13  }
  0x2f   : > { %p37_p1 = scmp.ge.s32.totalorder %s35_s29, 2  ;;  %s44_s26 = sadd.s32 1, %s2453_s17 }
  0x30   : > { %p51_p2 = scmp.ne.s32.totalorder %s2453_s17, %s2449_s16  ;;  %p52_p4 = scmp.eq.s32.totalorder %s2465_s20, 0 }
  0x31   : > { %s2882_s29 = smov (%p37_p1, %s35_s29), 0  ;;  %p2862_p8 = scmp.eq.s32.totalorder %s2533_s21, 1 }
  0x32   : > { %2861 = sst [smem:[#allocation13_spill]] %s2882_s29  ;;  %p53_p6 = por %p52_p4, %p51_p2 }
  0x33   : > { %p2590_p10 = por %p2862_p8, %p51_p2  ;;  %s39_s5 = ssub.s32 %s2461_s19, %s2882_s29 }
  0x34   : > { %p2117_p12 = scmp.lt.s32.totalorder %s2465_s20, 2  ;;  %p42_p13 = scmp.eq.s32.totalorder %s39_s5, 0 }
  0x35   : > { %s2598_s28 = sand.u32 1, %s2453_s17   ;;  %s2086_s7 = smul.u32 1728, %s2461_s19 }
  0x36   : > { %s2085_s27 = smul.u32 108, %s2598_s28  ;;  %p2605_p11 = pnand %p2117_p12, %p53_p6 }
  0x37   : > { %s2602_s6 = scalar_select %p42_p13, %s2453_s17, %s44_s26  }
  0x38   : > { %s199_s8 = scalar_lea.vmem [#allocation2], %s2085_s27  ;;  %s2866_s0 = sld [smem:[#allocation15_spill]] }
  0x39   : > { %2864 = sst [smem:[#allocation14_spill]] %s2602_s6  ;;  %s209_s9 = sshll.u32 %s199_s8, 4  ;;  %s2614_s9 = int_to_ptr.vmem [resolvable:$true] %s209_s9 }
  0x3a   : > { %s196_s22 = scalar_lea.sflag [#allocation3], %s2598_s28  ;;  %p2317_p3 = pneg %p2605_p11 }
  0x3e   : > { %s2612_s13 = scalar_lea.hbm %s2866_s0, %s2086_s7  ;;  %s2320_s7 = scalar_lea.hbm %s2866_s0, 3456 }
  0x3f   : > { %s2315_s26 = scalar_lea.hbm %s2612_s13, 1728  ;;  %p2321_p9 = scmp.lt.u32.totalorder %s2612_s13, %s2866_s0 }
  0x40   : > { %p2316_p0 = scmp.ne.s32.totalorder %s2612_s13, %s2315_s26  ;;  %p2322_p1 = scmp.lt.u32.totalorder %s2320_s7, %s2315_s26 }
  0x41   : > { %p2324_p4 = scmp.lt.u32.totalorder %s2315_s26, %s2612_s13 }
  0x42   : > { %p2318_p5 = pnand %p2317_p3, %p2316_p0  ;;  %p2323_p2 = por %p2322_p1, %p2321_p9 }
  0x44   : > { %p2319_p7 = pneg %p2318_p5  ;;  %p2325_p6 = por %p2324_p4, %p2323_p2 }
  0x46   : > { %p2326_p8 = pnand %p2325_p6, %p2319_p7 }
  0x48   : > { %2329 = shalt.err (!%p2326_p8)
}
  0x49   : > { %s2330_s12 = scalar_lea.vmem %s2614_s9, 1728  ;;  %s2470_s5 = smov [#allocation2]  }
  0x4a   : > { %p2331_p12 = scmp.ne.s32.totalorder %s2614_s9, %s2330_s12  ;;  %s2335_s27 = sshll.u32 %s2470_s5, 4  ;;  %s2336_s27 = int_to_ptr.vmem [resolvable:$false] %s2335_s27 }
  0x4b   : > { %s2337_s8 = scalar_lea.vmem %s2336_s27, 3456  ;;  %p2338_p5 = scmp.lt.s32.totalorder %s2614_s9, %s2336_s27 }
  0x4c   : > { %p2333_p13 = pnand %p2331_p12, %p2317_p3  ;;  %p2339_p9 = scmp.lt.s32.totalorder %s2337_s8, %s2330_s12 }
  0x4e   : > { %p2334_p0 = pneg %p2333_p13  ;;  %p2340_p1 = por %p2339_p9, %p2338_p5 }
  0x50   : > { %p2341_p2 = pnand %p2340_p1, %p2334_p0 }
  0x52   : > { %2344 = shalt.err (!%p2341_p2)
}
  0x53   : > { %s2471_s26 = smov 192   ;;  %s2472_s7 = smov 12  }
  0x54   : > { %2108 = dma.hbm_to_vmem [thread:$0]  (!%p2605_p11), %s2612_s13, 1728, %s2614_s9, %s196_s22, %s2471_s26, %s2471_s26, %s2472_s7  }
  0x55   : > { %s2087_s11 = smul.u32 96, %s2598_s28  ;;  %s2867_s2 = sand.u32 1, %s2465_s20  }
  0x56   : > { %s2088_s12 = smul.u32 1536, %s2461_s19  ;;  %s2659_s29 = scalar_lea.sflag [#allocation6], %s2867_s2 }
  0x57   : > { %s223_s14 = scalar_lea.vmem [#allocation5], %s2087_s11  ;;  %s2350_s13 = scalar_lea.hbm %s2846_s1, 3072 }
  0x58   : > { %s2653_s8 = scalar_lea.hbm %s2846_s1, %s2088_s12  ;;  %s233_s0 = sshll.u32 %s223_s14, 4  ;;  %s2655_s0 = int_to_ptr.vmem [resolvable:$true] %s233_s0 }
  0x59   : > { %s2345_s6 = scalar_lea.hbm %s2653_s8, 1536  ;;  %p2351_p8 = scmp.lt.u32.totalorder %s2653_s8, %s2846_s1 }
  0x5a   : > { %p2346_p7 = scmp.ne.s32.totalorder %s2653_s8, %s2345_s6  ;;  %p2352_p12 = scmp.lt.u32.totalorder %s2350_s13, %s2345_s6 }
  0x5b   : > { %p2354_p0 = scmp.lt.u32.totalorder %s2345_s6, %s2653_s8 }
  0x5c   : > { %p2348_p4 = pnand %p2346_p7, %p2317_p3  ;;  %p2353_p13 = por %p2352_p12, %p2351_p8 }
  0x5e   : > { %p2349_p6 = pneg %p2348_p4  ;;  %p2355_p5 = por %p2354_p0, %p2353_p13 }
  0x60   : > { %p2356_p9 = pnand %p2355_p5, %p2349_p6 }
  0x62   : > { %2359 = shalt.err (!%p2356_p9)
}
  0x63   : > { %s2360_s2 = scalar_lea.vmem %s2655_s0, 1536  ;;  %s2473_s14 = smov [#allocation5]  }
  0x64   : > { %p2361_p1 = scmp.ne.s32.totalorder %s2655_s0, %s2360_s2  ;;  %s2365_s11 = sshll.u32 %s2473_s14, 4  ;;  %s2366_s11 = int_to_ptr.vmem [resolvable:$false] %s2365_s11 }
  0x65   : > { %s2367_s5 = scalar_lea.vmem %s2366_s11, 3072  ;;  %p2368_p4 = scmp.lt.s32.totalorder %s2655_s0, %s2366_s11 }
  0x66   : > { %p2363_p2 = pnand %p2361_p1, %p2317_p3  ;;  %p2369_p8 = scmp.lt.s32.totalorder %s2367_s5, %s2360_s2 }
  0x68   : > { %p2364_p7 = pneg %p2363_p2  ;;  %p2370_p12 = por %p2369_p8, %p2368_p4 }
  0x6a   : > { %p2371_p13 = pnand %p2370_p12, %p2364_p7 }
  0x6c   : > { %2374 = shalt.err (!%p2371_p13)
}
  0x6d   : > { %2111 = dma.hbm_to_vmem [thread:$0]  (!%p2605_p11), %s2653_s8, 1536, %s2655_s0, %s2659_s29, %s2471_s26, %s2471_s26, %s2472_s7  }
  0x6e   : > { %p2868_p3 = scmp.ne.s32.totalorder %s2858_s25, 0 }
  0x6f   : > { %s2691_s6 = sand.u32 (!%p2868_p3), 1, %s2449_s16   ;;  %p2869_p6 = scmp.ne.s32.totalorder (!%p2868_p3), %s2856_s23, 0 }
  0x70   : > { %245 = sbr.rel (%p2868_p3) target bundleno = 487 (0x1e7), region = 36  ;;  %s248_s28 = scalar_lea.sflag (!%p2868_p3), [#allocation3], %s2691_s6 }
  0x71   : > { %s2089_s27 = smul.u32 (!%p2868_p3), 108, %s2691_s6 }
  0x73   : > { %s2695_s9 = scalar_lea.vmem (!%p2868_p3), [#allocation2], %s2089_s27 }
  0x77   : > { %2428 = dma.done.wait (%p2869_p6), %s248_s28, 1728  }
  0x78   : > { %2430 = vsyncadd (%p2869_p6), %s248_s28, 4294965568  ;;  %s256_s0 = sand.u32 1, %s2533_s21   ;;  %s2090_s25 = smul.u32 96, %s2691_s6 }
  0x79   : > { %s257_s29 = scalar_lea.sflag [#allocation6], %s256_s0 }
  0x7a   : > { %s2703_s10 = scalar_lea.vmem [#allocation5], %s2090_s25 }
  0x7b   : > { %2432 = dma.done.wait (%p2869_p6), %s257_s29, 1536  }
  0x7c   : > { %2434 = vsyncadd (%p2869_p6), %s257_s29, 4294965760  ;;  %p2870_p11 = scmp.eq.s32.totalorder %s2533_s21, 0 }
  0x7e   : > { %2436 = dma.done.wait (%p2870_p11), [#allocation6], 9216   ;;  %p2871_p0 = pmov %p2870_p11 }
  0x7f   : > { %v2175_v0 = vld [vmem:[#allocation7 + $0x100] sm:$0xff]   ;;  %v2178_v3 = vld [vmem:[#allocation7 + $0x108] sm:$0xff]   ;;  %v2181_v6 = vld [vmem:[#allocation7 + $0x110] sm:$0xff]   ;;  %s1685_s21 = sshll.u32 %s2691_s6, 6  ;;  %s1816_s13 = sshll.u32 %s2457_s18, 10 }
  0x80   : > { %2438 = vsyncadd (%p2871_p0), [#allocation6], 4294958080  ;;  %v2176_v1 = vld [vmem:[#allocation7 + $0x140] sm:$0xff]   ;;  %1817 = vmatprep.subr.bf16.mxu0 %v2175_v0  ;;  %v2179_v4 = vld [vmem:[#allocation7 + $0x148] sm:$0xff]   ;;  %s2778_s7 = scalar_lea.vmem [#allocation8], %s1685_s21  ;;  %s2794_s2 = scalar_lea.hbm %s2849_s4, %s1816_s13 }
  0x81   : > { %v2177_v2 = vld [vmem:[#allocation7 + $0xc0] sm:$0xff]   ;;  %1973 = vmatprep.subr.bf16.mxu1 %v2176_v1  ;;  %v2180_v5 = vld [vmem:[#allocation7 + $0xc8] sm:$0xff]   ;;  %v2182_v7 = vld [vmem:[#allocation7 + $0x150] sm:$0xff]   ;;  %s1554_s8 = sshll.u32 %s2778_s7, 4  ;;  %s1539_s14 = scalar_lea.sflag [#allocation4], %s2691_s6  ;;  %s2789_s8 = int_to_ptr.vmem [resolvable:$true] %s1554_s8 }
  0x82   : > { %1818 = vmatpush3.bf16.msra.mxu0 %v2177_v2  ;;  %1974 = vmatpush3.bf16.msra.mxu1 %v2176_v1  ;;  %v2183_v8 = vld [vmem:[#allocation7 + $0xd0] sm:$0xff]   ;;  %v2184_v9 = vld [vmem:[#allocation7 + $0x118] sm:$0xff]   ;;  %v2187_v12 = vld [vmem:[#allocation7 + $0x120] sm:$0xff]   ;;  %s2375_s11 = scalar_lea.vmem %s2789_s8, 1024  ;;  %s2474_s18 = smov [#allocation8]  }
  0x83   : > { %1819 = vmatprep.subr.bf16.mxu0 %v2178_v3  ;;  %1975 = vmatprep.subr.bf16.mxu1 %v2179_v4  ;;  %v2185_v10 = vld [vmem:[#allocation7 + $0x158] sm:$0xff]   ;;  %v2188_v13 = vld [vmem:[#allocation7 + $0x160] sm:$0xff]   ;;  %v2190_v15 = vld [vmem:[#allocation7 + $0x128] sm:$0xff]   ;;  %p2376_p5 = scmp.ne.s32.totalorder %s2789_s8, %s2375_s11  ;;  %s2379_s5 = sshll.u32 %s2474_s18, 4  ;;  %s2380_s5 = int_to_ptr.vmem [resolvable:$false] %s2379_s5 }
  0x84   : > { %v2186_v11 = vld [vmem:[#allocation7 + $0xd8] sm:$0xff]   ;;  %v2189_v14 = vld [vmem:[#allocation7 + $0xe0] sm:$0xff]   ;;  %v2191_v16 = vld [vmem:[#allocation7 + $0x168] sm:$0xff]   ;;  %s2381_s27 = scalar_lea.vmem %s2380_s5, 2048  ;;  %p2382_p2 = scmp.lt.s32.totalorder %s2789_s8, %s2380_s5 }
  0x85   : > { %v2192_v17 = vld [vmem:[#allocation7 + $0xe8] sm:$0xff]   ;;  %v2193_v18 = vld [vmem:[#allocation7 + $0x130] sm:$0xff]   ;;  %v2196_v21 = vld [vmem:[#allocation7 + $0x138] sm:$0xff]   ;;  %p2377_p9 = pnand %p2376_p5, %p2590_p10  ;;  %p2383_p7 = scmp.lt.s32.totalorder %s2381_s27, %s2375_s11 }
  0x86   : > { %1820 = vmatpush3.bf16.msra.mxu0 %v2180_v5  ;;  %1976 = vmatpush3.bf16.msra.mxu1 %v2179_v4  ;;  %v2194_v19 = vld [vmem:[#allocation7 + $0x170] sm:$0xff]   ;;  %v2197_v22 = vld [vmem:[#allocation7 + $0x178] sm:$0xff]   ;;  %v2203_v26 = vld [vmem:[#allocation7 + $0x40] sm:$0xff]  }
  0x87   : > { %1821 = vmatprep.subr.bf16.mxu0 %v2181_v6  ;;  %1977 = vmatprep.subr.bf16.mxu1 %v2182_v7  ;;  %v2195_v20 = vld [vmem:[#allocation7 + $0xf0] sm:$0xff]   ;;  %v2198_v25 = vld [vmem:[#allocation7 + $0xf8] sm:$0xff]   ;;  %v2199_v27 = vld [vmem:[%s2703_s10] ss:$12 sps:$4 sm:$0xff]   ;;  %p2378_p1 = pneg %p2377_p9  ;;  %p2384_p4 = por %p2383_p7, %p2382_p2 }
  0x88   : > { %v2201_v23 = vld [vmem:[%s2703_s10 + $0x4] ss:$12 sps:$4 sm:$0xff]   ;;  %v2202_v24 = vld [vmem:[%s2703_s10 + $0x8] ss:$12 sps:$4 sm:$0xff]   ;;  %v2205_v29 = vld [vmem:[%s2703_s10 + $0x20] ss:$12 sps:$4 sm:$0xff]  }
  0x89   : > { %684 = vmatprep.mubr.bf16.mxu0 %v2201_v23  ;;  %v2204_v28 = vld [vmem:[#allocation7 + $0x80] sm:$0xff]   ;;  %1989 = vmatprep.mubr.bf16.mxu1 %v2202_v24  ;;  %v2207_v31 = vld [vmem:[#allocation7 + $0x48] sm:$0xff]   ;;  %v2213_v35 = vld [vmem:[#allocation7 + $0x50] sm:$0xff]   ;;  %p2385_p8 = pnand %p2384_p4, %p2378_p1 }
  0x8a   : > { %1822 = vmatpush3.bf16.msra.mxu0 %v2183_v8  ;;  %1978 = vmatpush3.bf16.msra.mxu1 %v2182_v7  ;;  %v2206_v30 = vld [vmem:[#allocation7] sm:$0xff]   ;;  %v2208_v32 = vld [vmem:[#allocation7 + $0x88] sm:$0xff]   ;;  %v2214_v36 = vld [vmem:[#allocation7 + $0x90] sm:$0xff]  }
  0x8b   : > { %1823 = vmatprep.subr.bf16.mxu0 %v2184_v9  ;;  %1979 = vmatprep.subr.bf16.mxu1 %v2185_v10  ;;  %v2210_v33 = vld [vmem:[%s2703_s10 + $0x1c] ss:$12 sps:$4 sm:$0xff]   ;;  %v2212_v37 = vld [vmem:[%s2703_s10 + $0x18] ss:$12 sps:$4 sm:$0xff]   ;;  %v2215_v38 = vld [vmem:[#allocation7 + $0x10] sm:$0xff]  }
  0x8c   : > { %v2209_v34 = vld [vmem:[#allocation7 + $0x8] sm:$0xff]   ;;  %v2216_v39 = vld [vmem:[#allocation7 + $0x58] sm:$0xff]   ;;  %v2219_v41 = vld [vmem:[%s2703_s10 + $0x34] ss:$12 sps:$4 sm:$0xff]  }
  0x8d   : > { %v2217_v40 = vld [vmem:[#allocation7 + $0x98] sm:$0xff]   ;;  %v2222_v43 = vld [vmem:[#allocation7 + $0x60] sm:$0xff]   ;;  %v2225_v47 = vld [vmem:[#allocation7 + $0x68] sm:$0xff]  }
  0x8e   : > { %1824 = vmatpush3.bf16.msra.mxu0 %v2186_v11  ;;  %1980 = vmatpush3.bf16.msra.mxu1 %v2185_v10  ;;  %v2218_v42 = vld [vmem:[#allocation7 + $0x18] sm:$0xff]   ;;  %v2223_v45 = vld [vmem:[#allocation7 + $0xa0] sm:$0xff]   ;;  %v2226_v48 = vld [vmem:[#allocation7 + $0xa8] sm:$0xff]  }
  0x8f   : > { %1825 = vmatprep.subr.bf16.mxu0 %v2187_v12  ;;  %1981 = vmatprep.subr.bf16.mxu1 %v2188_v13  ;;  %v2221_v44 = vld [vmem:[%s2703_s10 + $0x30] ss:$12 sps:$4 sm:$0xff]   ;;  %v2224_v46 = vld [vmem:[#allocation7 + $0x20] sm:$0xff]   ;;  %v2228_v49 = vld [vmem:[%s2703_s10 + $0x4c] ss:$12 sps:$4 sm:$0xff]  }
  0x90   : > { %v2227_v50 = vld [vmem:[#allocation7 + $0x28] sm:$0xff]   ;;  %v2231_v51 = vld [vmem:[%s2703_s10 + $0x38] ss:$12 sps:$4 sm:$0xff]   ;;  %v2232_v52 = vld [vmem:[#allocation7 + $0x70] sm:$0xff]  }
  0x91   : > { %v2233_v53 = vld [vmem:[#allocation7 + $0xb0] sm:$0xff]   ;;  %v2236_v57 = vld [vmem:[#allocation7 + $0x78] sm:$0xff]   ;;  %v2242_v0 = vld [vmem:[#allocation7 + $0x1c0] sm:$0xff]  }
  0x92   : > { %1826 = vmatpush3.bf16.msra.mxu0 %v2189_v14  ;;  %1982 = vmatpush3.bf16.msra.mxu1 %v2188_v13  ;;  %v2234_v54 = vld [vmem:[%s2703_s10 + $0x50] ss:$12 sps:$4 sm:$0xff]   ;;  %v2230_v55 = vld [vmem:[%s2703_s10 + $0x48] ss:$12 sps:$4 sm:$0xff]   ;;  %v2243_v1 = vld [vmem:[#allocation7 + $0x200] sm:$0xff]  }
  0x93   : > { %1827 = vmatprep.subr.bf16.mxu0 %v2190_v15  ;;  %1983 = vmatprep.subr.bf16.mxu1 %v2191_v16  ;;  %v2235_v56 = vld [vmem:[#allocation7 + $0x30] sm:$0xff]   ;;  %v2237_v58 = vld [vmem:[#allocation7 + $0xb8] sm:$0xff]   ;;  %v2245_v4 = vld [vmem:[#allocation7 + $0x180] sm:$0xff]  }
  0x94   : > { %v298_v59 = vld [vmem:[%s2695_s9] sm:$0xff]  ;;  %v2727_v60 = vld [vmem:[%s2695_s9 + $0xc] sm:$0xff]  ;;  %v2241_v62 = vld [vmem:[%s2695_s9 + $0x8] ss:$12 sps:$4 sm:$0xff]  }
  0x95   : > { %v1739_v61 = vcombine.high %v298_v59, %v2727_v60  ;;  %v2238_v63 = vld [vmem:[#allocation7 + $0x38] sm:$0xff]   ;;  %v2244_v2 = vld [vmem:[%s2695_s9 + $0x20] ss:$12 sps:$4 sm:$0xff]   ;;  %v1738_v3 = vcombine.low %v298_v59, %v2727_v60  ;;  %v2734_v7 = vld [vmem:[%s2695_s9 + $0x18] sm:$0xff] }
  0x96   : > { %1828 = vmatpush3.bf16.msra.mxu0 %v2192_v17  ;;  %1984 = vmatpush3.bf16.msra.mxu1 %v2191_v16  ;;  %v2246_v5 = vld [vmem:[#allocation7 + $0x1c8] sm:$0xff]   ;;  %v2251_v11 = vld [vmem:[#allocation7 + $0x1d0] sm:$0xff]   ;;  %v2254_v15 = vld [vmem:[#allocation7 + $0x1d8] sm:$0xff]  }
  0x97   : > { %1829 = vmatprep.subr.bf16.mxu0 %v2193_v18  ;;  %1985 = vmatprep.subr.bf16.mxu1 %v2194_v19  ;;  %v2247_v6 = vld [vmem:[#allocation7 + $0x208] sm:$0xff]   ;;  %v2252_v12 = vld [vmem:[#allocation7 + $0x210] sm:$0xff]   ;;  %v2255_v16 = vld [vmem:[#allocation7 + $0x218] sm:$0xff]  }
  0x98   : > { %v2737_v8 = vld [vmem:[%s2695_s9 + $0x24] sm:$0xff]  ;;  %v2744_v17 = vld [vmem:[%s2695_s9 + $0x30] sm:$0xff]  ;;  %v2747_v18 = vld [vmem:[%s2695_s9 + $0x3c] sm:$0xff] }
  0x99   : > { %v2248_v9 = vld [vmem:[#allocation7 + $0x188] sm:$0xff]   ;;  %v1742_v10 = vcombine.high %v2734_v7, %v2737_v8  ;;  %v2253_v13 = vld [vmem:[#allocation7 + $0x190] sm:$0xff]   ;;  %v1741_v14 = vcombine.low %v2734_v7, %v2737_v8  ;;  %v2261_v23 = vld [vmem:[#allocation7 + $0x1a0] sm:$0xff]   ;;  %v1744_v24 = vcombine.low %v2744_v17, %v2747_v18 }
  0x9a   : > { %1830 = vmatpush3.bf16.msra.mxu0 %v2195_v20  ;;  %1986 = vmatpush3.bf16.msra.mxu1 %v2194_v19  ;;  %v1745_v19 = vcombine.high %v2744_v17, %v2747_v18  ;;  %v2256_v20 = vld [vmem:[#allocation7 + $0x198] sm:$0xff]  }
  0x9b   : > { %1831 = vmatprep.subr.bf16.mxu0 %v2196_v21  ;;  %1987 = vmatprep.subr.bf16.mxu1 %v2197_v22  ;;  %v2259_v21 = vld [vmem:[#allocation7 + $0x1e0] sm:$0xff]  }
  0x9e   : > { %1832 = vmatpush3.bf16.msra.mxu0 %v2198_v25  ;;  %1988 = vmatpush3.bf16.msra.mxu1 %v2197_v22  ;;  %v2260_v22 = vld [vmem:[#allocation7 + $0x220] sm:$0xff]   ;;  %v2262_v25 = vld [vmem:[#allocation7 + $0x1e8] sm:$0xff]  }
  0x9f   : > { %1869 = vmatprep.subr.bf16.mxu0 %v2203_v26  ;;  %1997 = vmatprep.subr.bf16.mxu1 %v2204_v28  ;;  %v2263_v26 = vld [vmem:[#allocation7 + $0x228] sm:$0xff]  }
  0xa1   : > { %685 = vmatmul.mubr.bf16.vlgmr.msra.gmra.mrb[0].mxu0 %v2199_v27  ;;  %1990 = vmatmul.mubr.bf16.vlgmr.msra.gmra.mrb[0].mxu1 %v2205_v29  ;;  %v310_v27 = vld [vmem:[%s2695_s9 + $0x48] sm:$0xff]  ;;  %v2266_v29 = vld [vmem:[%s2695_s9 + $0x38] ss:$12 sps:$4 sm:$0xff]  }
  0xa2   : > { %1870 = vmatpush3.bf16.msra.mxu0 %v2206_v30  ;;  %1998 = vmatpush3.bf16.msra.mxu1 %v2204_v28  ;;  %v312_v28 = vld [vmem:[%s2695_s9 + $0x54] sm:$0xff]  ;;  %v2268_v30 = vld [vmem:[%s2695_s9 + $0x50] ss:$12 sps:$4 sm:$0xff]  }
  0xa3   : > { %1871 = vmatprep.subr.bf16.mxu0 %v2207_v31  ;;  %1999 = vmatprep.subr.bf16.mxu1 %v2208_v32  ;;  %v1748_v31 = vcombine.high %v310_v27, %v312_v28 }
  0xa4   : > { %692 = vmatprep.mubr.bf16.mxu0 %v2210_v33  ;;  %1993 = vmatprep.mubr.bf16.mxu1 %v2231_v51  ;;  %v2269_v33 = vld [vmem:[#allocation7 + $0x1f0] sm:$0xff]  }
  0xa6   : > { %1872 = vmatpush3.bf16.msra.mxu0 %v2209_v34  ;;  %2000 = vmatpush3.bf16.msra.mxu1 %v2208_v32  ;;  %v2264_v32 = vld [vmem:[#allocation7 + $0x1a8] sm:$0xff]   ;;  %v2270_v34 = vld [vmem:[#allocation7 + $0x230] sm:$0xff]  }
  0xa7   : > { %1873 = vmatprep.subr.bf16.mxu0 %v2213_v35  ;;  %2001 = vmatprep.subr.bf16.mxu1 %v2214_v36  ;;  %v2271_v35 = vld [vmem:[#allocation7 + $0x1b0] sm:$0xff]  }
  0xa9   : > { %693 = vmatmul.mubr.bf16.gmra.mrb[4].mxu0 %v2212_v37  ;;  %1994 = vmatmul.mubr.bf16.gmra.mrb[4].mxu1 %v2234_v54  ;;  %v2272_v37 = vld [vmem:[#allocation7 + $0x1f8] sm:$0xff]  }
  0xaa   : > { %1874 = vmatpush3.bf16.msra.mxu0 %v2215_v38  ;;  %2002 = vmatpush3.bf16.msra.mxu1 %v2214_v36  ;;  %v1747_v36 = vcombine.low %v310_v27, %v312_v28  ;;  %v2277_v38 = vld [vmem:[%s2695_s9 + $0x14] ss:$12 sps:$4 sm:$0xff]  }
  0xab   : > { %1875 = vmatprep.subr.bf16.mxu0 %v2216_v39  ;;  %2003 = vmatprep.subr.bf16.mxu1 %v2217_v40  ;;  %v2273_v39 = vld [vmem:[#allocation7 + $0x238] sm:$0xff]  }
  0xac   : > { %700 = vmatprep.mubr.bf16.mxu0 %v2219_v41  ;;  %2013 = vmatprep.mubr.bf16.mxu1 %v2241_v62  ;;  %v2274_v41 = vld [vmem:[#allocation7 + $0x1b8] sm:$0xff]  }
  0xae   : > { %1876 = vmatpush3.bf16.msra.mxu0 %v2218_v42  ;;  %2004 = vmatpush3.bf16.msra.mxu1 %v2217_v40  ;;  %v1775_v40 = vcombine.high %v2727_v60, %v2734_v7  ;;  %v1774_v42 = vcombine.low %v2727_v60, %v2734_v7 }
  0xaf   : > { %1877 = vmatprep.subr.bf16.mxu0 %v2222_v43  ;;  %2005 = vmatprep.subr.bf16.mxu1 %v2223_v45  ;;  %v2278_v43 = vld [vmem:[%s2695_s9 + $0x2c] ss:$12 sps:$4 sm:$0xff]  }
  0xb1   : > { %701 = vmatmul.mubr.bf16.gmra.mrb[8].mxu0 %v2221_v44  ;;  %v1778_v44 = vcombine.high %v2737_v8, %v2744_v17 }
  0xb2   : > { %1878 = vmatpush3.bf16.msra.mxu0 %v2224_v46  ;;  %2006 = vmatpush3.bf16.msra.mxu1 %v2223_v45  ;;  %v2280_v45 = vld [vmem:[%s2695_s9 + $0x44] ss:$12 sps:$4 sm:$0xff]   ;;  %v1777_v46 = vcombine.low %v2737_v8, %v2744_v17 }
  0xb3   : > { %1879 = vmatprep.subr.bf16.mxu0 %v2225_v47  ;;  %2007 = vmatprep.subr.bf16.mxu1 %v2226_v48  ;;  %v2282_v47 = vld [vmem:[%s2695_s9 + $0x5c] ss:$12 sps:$4 sm:$0xff]  }
  0xb4   : > { %708 = vmatprep.mubr.bf16.mxu0 %v2228_v49  ;;  %v1700_v49 = vld [vmem:[%s2695_s9 + $0x60] sm:$0xff] }
  0xb5   : > { %v1784_v51 = vcombine.high %v312_v28, %v1700_v49 }
  0xb6   : > { %1880 = vmatpush3.bf16.msra.mxu0 %v2227_v50  ;;  %2008 = vmatpush3.bf16.msra.mxu1 %v2226_v48  ;;  %v1781_v48 = vcombine.high %v2747_v18, %v310_v27  ;;  %v1780_v50 = vcombine.low %v2747_v18, %v310_v27 }
  0xb7   : > { %1881 = vmatprep.subr.bf16.mxu0 %v2232_v52  ;;  %2009 = vmatprep.subr.bf16.mxu1 %v2233_v53  ;;  %v1783_v52 = vcombine.low %v312_v28, %v1700_v49 }
  0xb9   : > { %709 = vmatmul.mubr.bf16.gmra.mrb[12].mxu0 %v2230_v55 }
  0xba   : > { %1882 = vmatpush3.bf16.msra.mxu0 %v2235_v56  ;;  %2010 = vmatpush3.bf16.msra.mxu1 %v2233_v53 }
  0xbb   : > { %1883 = vmatprep.subr.bf16.mxu0 %v2236_v57  ;;  %2011 = vmatprep.subr.bf16.mxu1 %v2237_v58 }
  0xbc   : > { %1022 = vmatprep.mubr.bf16.mxu0 %v1739_v61 }
  0xbe   : > { %1884 = vmatpush3.bf16.msra.mxu0 %v2238_v63  ;;  %2012 = vmatpush3.bf16.msra.mxu1 %v2237_v58 }
  0xbf   : > { %1921 = vmatprep.subr.bf16.mxu0 %v2242_v0  ;;  %2021 = vmatprep.subr.bf16.mxu1 %v2243_v1 }
  0xc1   : > { %1023 = vmatmul.mubr.bf16.vlgmr.msra.gmra.mrb[16].mxu0 %v1738_v3  ;;  %2014 = vmatmul.mubr.bf16.vlgmr.msra.gmra.mrb[0].mxu1 %v2244_v2 }
  0xc2   : > { %1922 = vmatpush3.bf16.msra.mxu0 %v2245_v4  ;;  %2022 = vmatpush3.bf16.msra.mxu1 %v2243_v1 }
  0xc3   : > { %1923 = vmatprep.subr.bf16.mxu0 %v2246_v5  ;;  %2023 = vmatprep.subr.bf16.mxu1 %v2247_v6 }
  0xc4   : > { %1030 = vmatprep.mubr.bf16.mxu0 %v1742_v10  ;;  %2017 = vmatprep.mubr.bf16.mxu1 %v2266_v29 }
  0xc6   : > { %1924 = vmatpush3.bf16.msra.mxu0 %v2248_v9  ;;  %2024 = vmatpush3.bf16.msra.mxu1 %v2247_v6 }
  0xc7   : > { %1925 = vmatprep.subr.bf16.mxu0 %v2251_v11  ;;  %2025 = vmatprep.subr.bf16.mxu1 %v2252_v12 }
  0xc9   : > { %1031 = vmatmul.mubr.bf16.gmra.mrb[20].mxu0 %v1741_v14  ;;  %2018 = vmatmul.mubr.bf16.gmra.mrb[4].mxu1 %v2268_v30 }
  0xca   : > { %1926 = vmatpush3.bf16.msra.mxu0 %v2253_v13  ;;  %2026 = vmatpush3.bf16.msra.mxu1 %v2252_v12 }
  0xcb   : > { %1927 = vmatprep.subr.bf16.mxu0 %v2254_v15  ;;  %2027 = vmatprep.subr.bf16.mxu1 %v2255_v16 }
  0xcc   : > { %1038 = vmatprep.mubr.bf16.mxu0 %v1745_v19  ;;  %2037 = vmatprep.mubr.bf16.mxu1 %v2277_v38 }
  0xce   : > { %1928 = vmatpush3.bf16.msra.mxu0 %v2256_v20  ;;  %2028 = vmatpush3.bf16.msra.mxu1 %v2255_v16 }
  0xcf   : > { %1929 = vmatprep.subr.bf16.mxu0 %v2259_v21  ;;  %2029 = vmatprep.subr.bf16.mxu1 %v2260_v22 }
  0xd1   : > { %1039 = vmatmul.mubr.bf16.gmra.mrb[24].mxu0 %v1744_v24 }
  0xd2   : > { %1930 = vmatpush3.bf16.msra.mxu0 %v2261_v23  ;;  %2030 = vmatpush3.bf16.msra.mxu1 %v2260_v22 }
  0xd3   : > { %1931 = vmatprep.subr.bf16.mxu0 %v2262_v25  ;;  %2031 = vmatprep.subr.bf16.mxu1 %v2263_v26 }
  0xd4   : > { %1046 = vmatprep.mubr.bf16.mxu0 %v1748_v31 }
  0xd6   : > { %1932 = vmatpush3.bf16.msra.mxu0 %v2264_v32  ;;  %2032 = vmatpush3.bf16.msra.mxu1 %v2263_v26 }
  0xd7   : > { %1933 = vmatprep.subr.bf16.mxu0 %v2269_v33  ;;  %2033 = vmatprep.subr.bf16.mxu1 %v2270_v34 }
  0xd9   : > { %1047 = vmatmul.mubr.bf16.gmra.mrb[28].mxu0 %v1747_v36 }
  0xda   : > { %1934 = vmatpush3.bf16.msra.mxu0 %v2271_v35  ;;  %2034 = vmatpush3.bf16.msra.mxu1 %v2270_v34 }
  0xdb   : > { %1935 = vmatprep.subr.bf16.mxu0 %v2272_v37  ;;  %2035 = vmatprep.subr.bf16.mxu1 %v2273_v39 }
  0xdc   : > { %1409 = vmatprep.mubr.bf16.mxu0 %v1775_v40 }
  0xde   : > { %1936 = vmatpush3.bf16.msra.mxu0 %v2274_v41  ;;  %2036 = vmatpush3.bf16.msra.mxu1 %v2273_v39 }
  0xe1   : > { %1410 = vmatmul.mubr.bf16.vlgmr.msra.gmra.mrb[32].mxu0 %v1774_v42  ;;  %2038 = vmatmul.mubr.bf16.vlgmr.msra.gmra.mrb[0].mxu1 %v2278_v43 }
  0xe2   : > { %1417 = vmatprep.mubr.bf16.mxu0 %v1778_v44  ;;  %2041 = vmatprep.mubr.bf16.mxu1 %v2280_v45 }
  0xe9   : > { %1418 = vmatmul.mubr.bf16.gmra.mrb[36].mxu0 %v1777_v46  ;;  %2042 = vmatmul.mubr.bf16.gmra.mrb[4].mxu1 %v2282_v47 }
  0xea   : > { %1425 = vmatprep.mubr.bf16.mxu0 %v1781_v48 }
  0xf1   : > { %1426 = vmatmul.mubr.bf16.gmra.mrb[40].mxu0 %v1780_v50 }
  0xf2   : > { %1433 = vmatprep.mubr.bf16.mxu0 %v1784_v51 }
  0xf9   : > { %1434 = vmatmul.mubr.bf16.gmra.mrb[44].mxu0 %v1783_v52 }
 0x174   : > { %v1833_v53 = vpop.f32.mrb[0].mxu0 }
 0x175   : > { %v1834_v54 = vpop.f32.mrb[1].mxu0 }
 0x176   : > { %v1835_v55 = vadd.f32 %v1834_v54, %v1833_v53  ;;  %v1836_v56 = vpop.f32.mrb[2].mxu0 }
 0x177   : > { %v1837_v57 = vpop.f32.mrb[3].mxu0 }
 0x178   : > { %v1838_v58 = vadd.f32 %v1837_v57, %v1836_v56  ;;  %v1810_v56 = vld [vmem:[%s2848_s3] ss:$0 sm:$0xff] }
 0x17c   : > { %v1839_v59 = vpop.f32.mrb[4].mxu0 }
 0x17d   : > { %v1840_v60 = vpop.f32.mrb[5].mxu0 }
 0x17e   : > { %v1841_v61 = vadd.f32 %v1840_v60, %v1839_v59  ;;  %v1842_v62 = vpop.f32.mrb[6].mxu0 }
 0x17f   : > { %v1843_v63 = vpop.f32.mrb[7].mxu0 }
 0x180   : > { %v1844_v0 = vadd.f32 %v1843_v63, %v1842_v62 }
 0x184   : > { %v1845_v1 = vpop.f32.mrb[8].mxu0 }
 0x185   : > { %v1846_v2 = vpop.f32.mrb[9].mxu0 }
 0x186   : > { %v1847_v3 = vadd.f32 %v1846_v2, %v1845_v1  ;;  %v1848_v4 = vpop.f32.mrb[10].mxu0 }
 0x187   : > { %v1849_v5 = vpop.f32.mrb[11].mxu0 }
 0x188   : > { %v1850_v6 = vadd.f32 %v1849_v5, %v1848_v4 }
 0x18c   : > { %v1851_v7 = vpop.f32.mrb[12].mxu0 }
 0x18d   : > { %v1852_v8 = vpop.f32.mrb[13].mxu0 }
 0x18e   : > { %v1853_v9 = vadd.f32 %v1852_v8, %v1851_v7  ;;  %v1854_v10 = vpop.f32.mrb[14].mxu0 }
 0x18f   : > { %v1855_v11 = vpop.f32.mrb[15].mxu0 }
 0x190   : > { %v1856_v12 = vadd.f32 %v1855_v11, %v1854_v10 }
 0x194   : > { %v1885_v13 = vpop.f32.mrb[16].mxu0 }
 0x195   : > { %v1886_v14 = vpop.f32.mrb[17].mxu0 }
 0x196   : > { %v1887_v15 = vadd.f32 %v1886_v14, %v1885_v13  ;;  %v1888_v16 = vpop.f32.mrb[18].mxu0 }
 0x197   : > { %v1889_v17 = vpop.f32.mrb[19].mxu0 }
 0x198   : > { %v2048_v18 = vadd.f32 %v1887_v15, %v1835_v55  ;;  %v1890_v19 = vadd.f32 %v1889_v17, %v1888_v16 }
 0x19a   : > { %v2054_v20 = vadd.f32 %v1890_v19, %v1838_v58 }
 0x19c   : > { %v1891_v21 = vpop.f32.mrb[20].mxu0 }
 0x19d   : > { %v1892_v22 = vpop.f32.mrb[21].mxu0 }
 0x19e   : > { %v1893_v23 = vadd.f32 %v1892_v22, %v1891_v21  ;;  %v1894_v24 = vpop.f32.mrb[22].mxu0 }
 0x19f   : > { %v1895_v25 = vpop.f32.mrb[23].mxu0 }
 0x1a0   : > { %v2045_v26 = vadd.f32 %v1893_v23, %v1841_v61  ;;  %v1896_v27 = vadd.f32 %v1895_v25, %v1894_v24 }
 0x1a2   : > { %v2051_v28 = vadd.f32 %v1896_v27, %v1844_v0 }
 0x1a4   : > { %v1897_v29 = vpop.f32.mrb[24].mxu0 }
 0x1a5   : > { %v1898_v30 = vpop.f32.mrb[25].mxu0 }
 0x1a6   : > { %v1899_v31 = vadd.f32 %v1898_v30, %v1897_v29  ;;  %v1900_v32 = vpop.f32.mrb[26].mxu0 }
 0x1a7   : > { %v1901_v33 = vpop.f32.mrb[27].mxu0 }
 0x1a8   : > { %v2060_v34 = vadd.f32 %v1899_v31, %v1847_v3  ;;  %v1902_v35 = vadd.f32 %v1901_v33, %v1900_v32 }
 0x1aa   : > { %v2066_v36 = vadd.f32 %v1902_v35, %v1850_v6 }
 0x1ac   : > { %v1903_v37 = vpop.f32.mrb[28].mxu0 }
 0x1ad   : > { %v1904_v38 = vpop.f32.mrb[29].mxu0 }
 0x1ae   : > { %v1905_v39 = vadd.f32 %v1904_v38, %v1903_v37  ;;  %v1906_v40 = vpop.f32.mrb[30].mxu0 }
 0x1af   : > { %v1907_v41 = vpop.f32.mrb[31].mxu0 }
 0x1b0   : > { %v2057_v42 = vadd.f32 %v1905_v39, %v1853_v9  ;;  %v1908_v43 = vadd.f32 %v1907_v41, %v1906_v40 }
 0x1b2   : > { %v2772_v44 = vadd.f32 %v1908_v43, %v1856_v12 }
 0x1b4   : > { %v1937_v45 = vpop.f32.mrb[32].mxu0  ;;  %v2039_v46 = vpop.f32.mrb[0].mxu1 }
 0x1b5   : > { %v1938_v47 = vpop.f32.mrb[33].mxu0  ;;  %v1476_v48 = vpop.f32.mrb[1].mxu1 }
 0x1b6   : > { %v1939_v49 = vadd.f32 %v1938_v47, %v1937_v45  ;;  %v1940_v50 = vpop.f32.mrb[34].mxu0  ;;  %v2040_v51 = vpop.f32.mrb[2].mxu1 }
 0x1b7   : > { %v1941_v52 = vpop.f32.mrb[35].mxu0  ;;  %v1479_v53 = vpop.f32.mrb[3].mxu1 }
 0x1b8   : > { %v2049_v54 = vadd.f32 %v2048_v18, %v1939_v49  ;;  %v1942_v55 = vadd.f32 %v1941_v52, %v1940_v50 }
 0x1ba   : > { %v2050_v57 = vadd.f32 %v2049_v54, %v1476_v48  ;;  %v2055_v58 = vadd.f32 %v2054_v20, %v1942_v55 }
 0x1bc   : > { %v1522_v59 = vadd.f32 %v2050_v57, %v1810_v56  ;;  %v2056_v60 = vadd.f32 %v2055_v58, %v1479_v53  ;;  %v1943_v61 = vpop.f32.mrb[36].mxu0  ;;  %v2043_v62 = vpop.f32.mrb[4].mxu1 }
 0x1bd   : > { %v1944_v63 = vpop.f32.mrb[37].mxu0  ;;  %v1492_v0 = vpop.f32.mrb[5].mxu1 }
 0x1be   : > { %1530 = vst [vmem:[%s2778_s7] sm:$0xff] %v1522_v59  ;;  %v1523_v1 = vadd.f32 %v2056_v60, %v1810_v56  ;;  %v1945_v2 = vadd.f32 %v1944_v63, %v1943_v61  ;;  %v1946_v3 = vpop.f32.mrb[38].mxu0  ;;  %v2044_v4 = vpop.f32.mrb[6].mxu1 }
 0x1bf   : > { %v1947_v5 = vpop.f32.mrb[39].mxu0  ;;  %v1495_v6 = vpop.f32.mrb[7].mxu1 }
 0x1c0   : > { %1531 = vst [vmem:[%s2778_s7 + $0x8] sm:$0xff] %v1523_v1  ;;  %v2046_v7 = vadd.f32 %v2045_v26, %v1945_v2  ;;  %v1948_v8 = vadd.f32 %v1947_v5, %v1946_v3 }
 0x1c2   : > { %v2047_v9 = vadd.f32 %v2046_v7, %v2039_v46  ;;  %v2052_v10 = vadd.f32 %v2051_v28, %v1948_v8 }
 0x1c4   : > { %v1524_v11 = vadd.f32 %v2047_v9, %v1810_v56  ;;  %v2053_v12 = vadd.f32 %v2052_v10, %v2040_v51  ;;  %v1949_v13 = vpop.f32.mrb[40].mxu0 }
 0x1c5   : > { %v1950_v14 = vpop.f32.mrb[41].mxu0 }
 0x1c6   : > { %1532 = vst [vmem:[%s2778_s7 + $0x10] sm:$0xff] %v1524_v11  ;;  %v1525_v15 = vadd.f32 %v2053_v12, %v1810_v56  ;;  %v1951_v16 = vadd.f32 %v1950_v14, %v1949_v13  ;;  %v1952_v17 = vpop.f32.mrb[42].mxu0 }
 0x1c7   : > { %v1953_v18 = vpop.f32.mrb[43].mxu0 }
 0x1c8   : > { %1533 = vst [vmem:[%s2778_s7 + $0x18] sm:$0xff] %v1525_v15  ;;  %v2061_v19 = vadd.f32 %v2060_v34, %v1951_v16  ;;  %v1954_v20 = vadd.f32 %v1953_v18, %v1952_v17 }
 0x1ca   : > { %v2062_v21 = vadd.f32 %v2061_v19, %v1492_v0  ;;  %v2067_v22 = vadd.f32 %v2066_v36, %v1954_v20 }
 0x1cc   : > { %v1526_v23 = vadd.f32 %v2062_v21, %v1810_v56  ;;  %v2068_v24 = vadd.f32 %v2067_v22, %v1495_v6  ;;  %v1955_v25 = vpop.f32.mrb[44].mxu0 }
 0x1cd   : > { %v1956_v26 = vpop.f32.mrb[45].mxu0 }
 0x1ce   : > { %1534 = vst [vmem:[%s2778_s7 + $0x20] sm:$0xff] %v1526_v23  ;;  %v1527_v27 = vadd.f32 %v2068_v24, %v1810_v56  ;;  %v1957_v28 = vadd.f32 %v1956_v26, %v1955_v25  ;;  %v1958_v29 = vpop.f32.mrb[46].mxu0 }
 0x1cf   : > { %v1959_v30 = vpop.f32.mrb[47].mxu0 }
 0x1d0   : > { %1535 = vst [vmem:[%s2778_s7 + $0x28] sm:$0xff] %v1527_v27  ;;  %v2058_v31 = vadd.f32 %v2057_v42, %v1957_v28  ;;  %v1960_v32 = vadd.f32 %v1959_v30, %v1958_v29 }
 0x1d2   : > { %v2059_v33 = vadd.f32 %v2058_v31, %v2043_v62  ;;  %v2064_v34 = vadd.f32 %v2772_v44, %v1960_v32 }
 0x1d4   : > { %v1528_v35 = vadd.f32 %v2059_v33, %v1810_v56  ;;  %v2065_v36 = vadd.f32 %v2064_v34, %v2044_v4 }
 0x1d6   : > { %1536 = vst [vmem:[%s2778_s7 + $0x30] sm:$0xff] %v1528_v35  ;;  %v1529_v37 = vadd.f32 %v2065_v36, %v1810_v56 }
 0x1d8   : > { %1537 = vst [vmem:[%s2778_s7 + $0x38] sm:$0xff] %v1529_v37 }
 0x1d9   : > { %2388 = shalt.err (!%p2385_p8)
}
 0x1da   : > { %s2389_s28 = scalar_lea.hbm %s2794_s2, 1024  ;;  %s2393_s25 = scalar_lea.hbm %s2849_s4, 2048 }
 0x1db   : > { %p2390_p12 = scmp.ne.s32.totalorder %s2794_s2, %s2389_s28  ;;  %p2394_p6 = scmp.lt.u32.totalorder %s2794_s2, %s2849_s4 }
 0x1dc   : > { %p2395_p11 = scmp.lt.u32.totalorder %s2393_s25, %s2389_s28  ;;  %p2397_p5 = scmp.lt.u32.totalorder %s2389_s28, %s2794_s2 }
 0x1dd   : > { %p2391_p13 = pnand %p2390_p12, %p2590_p10 }
 0x1de   : > { %p2396_p0 = por %p2395_p11, %p2394_p6 }
 0x1df   : > { %p2392_p3 = pneg %p2391_p13 }
 0x1e0   : > { %p2398_p9 = por %p2397_p5, %p2396_p0 }
 0x1e2   : > { %p2399_p1 = pnand %p2398_p9, %p2392_p3 }
 0x1e4   : > { %2402 = shalt.err (!%p2399_p1)
}
 0x1e5   : > { %s2475_s21 = smov 128   ;;  %s2476_s23 = smov 8  }
 0x1e6   : > { %2099 = dma.vmem_to_hbm [thread:$0]  (%p2590_p10), %s2789_s8, 1024, %s2794_s2, %s1539_s14, %s2475_s21, %s2475_s21, %s2476_s23  }
 0x1e7 PF: > { %s1569_s26 = sand.u32 1, %s2445_s15   ;;  %p2872_p2 = scmp.ne.s32.totalorder %s2857_s24, 0 }
 0x1e8   : > { %p2873_p7 = scmp.ge.s32.totalorder %s2465_s20, 2  ;;  %s1570_s7 = scalar_lea.sflag [#allocation4], %s1569_s26 }
 0x1ea   : > { %p2113_p4 = pnand %p2873_p7, %p2872_p2 }
 0x1ec   : > { %2440 = dma.done.wait (!%p2113_p4), %s1570_s7, 1024  }
 0x1ed   : > { %2442 = vsyncadd (!%p2113_p4), %s1570_s7, 4294966272  ;;  %s23_s20 = sadd.s32 1, %s2465_s20   ;;  %s2874_s13 = sld [smem:[#allocation14_spill]] }
 0x1ee   : > { %p20_p8 = scmp.ge.s32.totalorder %s23_s20, 4   ;;  %s2875_s30 = sld [smem:[#allocation13_spill]] }
 0x1ef   : > { %s2876_s15 = smov %s2449_s16  ;;  %s2877_s16 = smov %s2453_s17 }
 0x1f0   : > { %s2879_s18 = smov %s2461_s19  ;;  %22 = sbr.rel (!%p20_p8) target bundleno = 11 (0xb), region = 101 }
 0x1f3   : > { %s2878_s17 = smov %s2874_s13 }
 0x1f4   : > { %s2880_s19 = smov %s2875_s30 }
 0x1f7   :  { %1575 = vsyncpa [#allocation3], 1 }
 0x1f8   :  { %1577 = vsyncpa [#allocation3 + $0x1], 1 }
 0x1f9   :  { %1578 = vsyncpa [#allocation6], 1 }
 0x1fa   :  { %1580 = vsyncpa [#allocation6 + $0x1], 1 }
 0x1fb   :  { %1581 = vsyncpa [#allocation4], 1 }
 0x1fc   :  { %1583 = vsyncpa [#allocation4 + $0x1], 1 }

</bundles_post_ra>
